<compile_context>
chip_gen: v7x
topology: tpu7x:2x2x1
jax: 0.10.0
libtpu: 0.0.40
codegen_flags: <defaults>
</compile_context>

<pallas_src>
import functools
import math

import jax
import jax.numpy as jnp
from jax.experimental import pallas as pl
from jax.experimental.pallas import tpu as pltpu

EPS = 1e-5  # F.layer_norm default

_MIB = 1024 * 1024


def _round_up(a, b):
    return ((a + b - 1) // b) * b


def _sublane_pack(dtype):
    return {4: 8, 2: 16, 1: 32}.get(jnp.dtype(dtype).itemsize, 8)


def _vmem_capacity_bytes():
    """Physical VMEM capacity; conservative (v7x, 64 MiB) if unknown."""
    try:
        info = pltpu.get_tpu_info()
        cap = int(getattr(info, "vmem_capacity_bytes", 0))
        if cap > 0:
            return cap
    except Exception:
        pass
    return 64 * _MIB


def _budgets():
    """(working-set budget, vmem_limit cap) per generation."""
    cap = _vmem_capacity_bytes()
    if cap <= 64 * _MIB:          # v7x-class: 64 MiB physical VMEM per TC
        return 24 * _MIB, 48 * _MIB
    return 48 * _MIB, 80 * _MIB   # v5e / v6e: 128 MiB physical VMEM


def _choose_block_rows(n_rows, width, itemsize, pack, ws_budget,
                       min_steps=4, min_block_bytes=2 * _MIB):
    """Largest pack-aligned row block whose double-buffered in+out working
    set fits ws_budget; no artificial row cap.  Prefers >= min_steps grid
    steps (megacore sharding / DMA overlap) but never shrinks a block below
    ~2 MiB just to get there."""
    per_row_ws = 4 * width * itemsize            # 2 in + 2 out buffers / row
    br = ws_budget // max(per_row_ws, 1)
    br = max(pack, (br // pack) * pack)
    br = min(br, _round_up(n_rows, pack))        # never bigger than the data
    while (br > pack
           and pl.cdiv(n_rows, br) < min_steps
           and (((br // 2) // pack) * pack) * width * itemsize
               >= min_block_bytes):
        br = max(pack, ((br // 2) // pack) * pack)
    if br >= n_rows:
        br = n_rows                               # single full block is legal
    return br


def _ln_kernel(x_ref, gb_ref, o_ref, *, eps):
    # x_ref: (block_rows, D); gb_ref: (2, D) = stacked [gamma; beta].
    x = x_ref[...].astype(jnp.float32)
    mean = jnp.mean(x, axis=-1, keepdims=True)
    c = x - mean
    var = jnp.mean(c * c, axis=-1, keepdims=True)
    inv = jax.lax.rsqrt(var + eps)
    g = gb_ref[0:1, :].astype(jnp.float32)
    b = gb_ref[1:2, :].astype(jnp.float32)
    o_ref[...] = (c * inv * g + b).astype(o_ref.dtype)


def _ln_folded_kernel(x_ref, gb_ref, m_ref, o_ref, *, eps):
    # Lane-dense path: x_ref is (block_rows, W) with W = G*dim, i.e. G real
    # rows packed per lane-slab row.  m_ref is a (W, W) block-diagonal
    # averaging matrix, so x @ m broadcasts each real row's mean to every
    # element of that row.  The segmented reduce runs on the idle MXU and the
    # whole kernel stays 2-D / 128-lane dense (unmasked loads and stores).
    x = x_ref[...].astype(jnp.float32)
    m = m_ref[...]
    mean = jnp.dot(x, m, precision=jax.lax.Precision.HIGHEST,
                   preferred_element_type=jnp.float32)
    c = x - mean
    var = jnp.dot(c * c, m, precision=jax.lax.Precision.HIGHEST,
                  preferred_element_type=jnp.float32)
    inv = jax.lax.rsqrt(var + eps)
    g = gb_ref[0:1, :].astype(jnp.float32)
    b = gb_ref[1:2, :].astype(jnp.float32)
    o_ref[...] = (c * inv * g + b).astype(o_ref.dtype)


def layer_norm(x, gamma, beta, *, eps=EPS):
    """LayerNorm over the last dim of x (any leading dims)."""
    orig_shape = x.shape
    dim = orig_shape[-1]
    dtype = x.dtype
    itemsize = jnp.dtype(dtype).itemsize
    pack = _sublane_pack(dtype)

    rows = 1
    for s in orig_shape[:-1]:
        rows *= s

    # Lane folding: whenever dim is not a multiple of 128 and W = lcm(dim,128)
    # is small, pack G = W // dim real rows per kernel row (pure row-major
    # reshape, no copy).  Only taken when rows % G == 0 so we never pad.
    fold = False
    W, G = dim, 1
    if dim % 128 != 0:
        lcm = (dim * 128) // math.gcd(dim, 128)
        g = lcm // dim
        if lcm <= 512 and rows % g == 0 and rows >= g:
            fold, W, G = True, lcm, g

    if fold:
        xk = x.reshape(rows // G, W)          # metadata-only reshape
        gk = jnp.tile(gamma.reshape(1, dim), (1, G))
        bk = jnp.tile(beta.reshape(1, dim), (1, G))
        gb = jnp.concatenate([gk, bk], axis=0)            # (2, W)
        seg = jnp.arange(W, dtype=jnp.int32) // dim
        m = (seg[:, None] == seg[None, :]).astype(jnp.float32) / float(dim)
    else:
        xk = x.reshape(rows, dim)
        gb = jnp.concatenate([gamma.reshape(1, dim),
                              beta.reshape(1, dim)], axis=0)  # (2, dim)
        m = None

    n_rows = xk.shape[0]
    ws_budget, limit_cap = _budgets()
    block_rows = _choose_block_rows(n_rows, W, itemsize, pack, ws_budget)
    grid = (pl.cdiv(n_rows, block_rows),)     # ragged last block is masked

    # VMEM limit: double-buffered x + out blocks plus resident gamma/beta/M
    # with ~50% headroom, capped per-generation (<=48 MiB on 64 MiB-VMEM
    # chips, <=80 MiB on 128 MiB-VMEM chips).
    block_bytes = block_rows * W * itemsize
    aux_bytes = 2 * W * jnp.dtype(gb.dtype).itemsize + (W * W * 4 if fold else 0)
    need = 4 * block_bytes + 2 * aux_bytes
    vmem_limit = int(min(limit_cap, max(32 * _MIB, (need * 3) // 2)))

    x_spec = pl.BlockSpec((block_rows, W), lambda i: (i, 0))
    gb_spec = pl.BlockSpec((2, W), lambda i: (0, 0))
    out_spec = pl.BlockSpec((block_rows, W), lambda i: (i, 0))

    if fold:
        kernel = functools.partial(_ln_folded_kernel, eps=eps)
        in_specs = [x_spec, gb_spec, pl.BlockSpec((W, W), lambda i: (0, 0))]
        args = (xk, gb, m)
    else:
        kernel = functools.partial(_ln_kernel, eps=eps)
        in_specs = [x_spec, gb_spec]
        args = (xk, gb)

    out = pl.pallas_call(
        kernel,
        out_shape=jax.ShapeDtypeStruct((n_rows, W), dtype),
        grid_spec=pltpu.PrefetchScalarGridSpec(
            num_scalar_prefetch=0,
            grid=grid,
            in_specs=in_specs,
            out_specs=out_spec,
        ),
        compiler_params=pltpu.CompilerParams(
            dimension_semantics=("parallel",),
            vmem_limit_bytes=vmem_limit,
        ),
    )(*args)

    return out.reshape(orig_shape)


if __name__ == "__main__":
    key = jax.random.PRNGKey(0)
    batch, seq, dim = 2, 8, 32
    x = jax.random.normal(key, (batch, seq, dim), dtype=jnp.float32)

    # Parameters exactly as the module's __init__: gamma=ones(dim), beta=zeros(dim)
    gamma = jnp.ones((dim,), dtype=jnp.float32)
    beta = jnp.zeros((dim,), dtype=jnp.float32)

    out = layer_norm(x, gamma, beta)
    jax.block_until_ready(out)

    # Reference check against plain-JAX layer norm.
    mean = jnp.mean(x, axis=-1, keepdims=True)
    var = jnp.mean((x - mean) ** 2, axis=-1, keepdims=True)
    ref = (x - mean) / jnp.sqrt(var + EPS) * gamma + beta
    err = jnp.max(jnp.abs(out - ref))
    assert err < 1e-4, f"mismatch vs reference: {err}"

    print("KERNEL_OK")
</pallas_src>

<mosaic_0001>
module attributes {stable_mosaic.version = 11 : i64} {
  func.func @_ln_folded_kernel(%arg0: i32, %arg1: memref<4x128xf32, #tpu.memory_space<vmem>>, %arg2: memref<2x128xf32, #tpu.memory_space<vmem>>, %arg3: memref<128x128xf32, #tpu.memory_space<vmem>>, %arg4: memref<4x128xf32, #tpu.memory_space<vmem>>) attributes {dimension_semantics = [#tpu.dimension_semantics<parallel>], iteration_bounds = array<i64: 1>, scalar_prefetch = 0 : i64, scratch_operands = 0 : i64, tpu.core_type = #tpu.core_type<tc>, window_params = [{transform_indices = @transform_0, window_bounds = array<i64: 4, 128>}, {pipeline_mode = #tpu.pipeline_mode<synchronous>, transform_indices = @transform_1, window_bounds = array<i64: 2, 128>}, {pipeline_mode = #tpu.pipeline_mode<synchronous>, transform_indices = @transform_2, window_bounds = array<i64: 128, 128>}, {transform_indices = @transform_3, window_bounds = array<i64: 4, 128>}]} {
    %c0 = arith.constant 0 : index
    %c0_0 = arith.constant 0 : index
    %0 = vector.load %arg1[%c0, %c0_0] : memref<4x128xf32, #tpu.memory_space<vmem>>, vector<4x128xf32>
    %c0_1 = arith.constant 0 : index
    %c0_2 = arith.constant 0 : index
    %1 = vector.load %arg3[%c0_1, %c0_2] : memref<128x128xf32, #tpu.memory_space<vmem>>, vector<128x128xf32>
    %cst = arith.constant dense<0.000000e+00> : vector<4x128xf32>
    %2 = tpu.matmul %0, %1, %cst {dimension_numbers = #tpu.dot_dimension_numbers<[1], [0], [0], [1], [0, 0, 1, 1], [], []>, precision = #tpu.contract_precision<fp32>} : vector<4x128xf32>, vector<128x128xf32>, vector<4x128xf32> -> vector<4x128xf32>
    %3 = arith.subf %0, %2 : vector<4x128xf32>
    %4 = arith.mulf %3, %3 : vector<4x128xf32>
    %cst_3 = arith.constant dense<0.000000e+00> : vector<4x128xf32>
    %5 = tpu.matmul %4, %1, %cst_3 {dimension_numbers = #tpu.dot_dimension_numbers<[1], [0], [0], [1], [0, 0, 1, 1], [], []>, precision = #tpu.contract_precision<fp32>} : vector<4x128xf32>, vector<128x128xf32>, vector<4x128xf32> -> vector<4x128xf32>
    %cst_4 = arith.constant 9.99999974E-6 : f32
    %6 = vector.broadcast %cst_4 : f32 to vector<4x128xf32>
    %7 = arith.addf %5, %6 : vector<4x128xf32>
    %8 = math.rsqrt %7 : vector<4x128xf32>
    %c0_5 = arith.constant 0 : index
    %c0_6 = arith.constant 0 : index
    %9 = vector.load %arg2[%c0_5, %c0_6] : memref<2x128xf32, #tpu.memory_space<vmem>>, vector<1x128xf32>
    %c1 = arith.constant 1 : index
    %c0_7 = arith.constant 0 : index
    %10 = vector.load %arg2[%c1, %c0_7] : memref<2x128xf32, #tpu.memory_space<vmem>>, vector<1x128xf32>
    %11 = arith.mulf %3, %8 : vector<4x128xf32>
    %12 = vector.broadcast %9 : vector<1x128xf32> to vector<4x128xf32>
    %13 = arith.mulf %11, %12 : vector<4x128xf32>
    %14 = vector.broadcast %10 : vector<1x128xf32> to vector<4x128xf32>
    %15 = arith.addf %13, %14 : vector<4x128xf32>
    %c0_8 = arith.constant 0 : index
    %c0_9 = arith.constant 0 : index
    %16 = vector.load %arg4[%c0_8, %c0_9] : memref<4x128xf32, #tpu.memory_space<vmem>>, vector<4x128xf32>
    tpu.vector_store %arg4[%c0_8, %c0_9], %15 {strides = array<i32>} : memref<4x128xf32, #tpu.memory_space<vmem>>, vector<4x128xf32>,
    return
  }
  func.func @transform_0(%arg0: i32) -> (i32, i32) {
    %c0_i32 = arith.constant 0 : i32
    %c0_i32_0 = arith.constant 0 : i32
    return %arg0, %c0_i32 : i32, i32
  }
  func.func @transform_1(%arg0: i32) -> (i32, i32) {
    %c0_i32 = arith.constant 0 : i32
    %c0_i32_0 = arith.constant 0 : i32
    %c0_i32_1 = arith.constant 0 : i32
    return %c0_i32, %c0_i32_0 : i32, i32
  }
  func.func @transform_2(%arg0: i32) -> (i32, i32) {
    %c0_i32 = arith.constant 0 : i32
    %c0_i32_0 = arith.constant 0 : i32
    %c0_i32_1 = arith.constant 0 : i32
    return %c0_i32, %c0_i32_0 : i32, i32
  }
  func.func @transform_3(%arg0: i32) -> (i32, i32) {
    %c0_i32 = arith.constant 0 : i32
    %c0_i32_0 = arith.constant 0 : i32
    return %arg0, %c0_i32 : i32, i32
  }
}

</mosaic_0001>

<bundles_post_ra>
// kernel: tpu_custom_call.1
= control target key start
LH: loop header
LB: loop body
LE: loop exit
PB: predicated region body
PF: predicated region fallthrough
CT: control target
= control target key end

     0   :  { %8 = vsyncpa [#allocation3], 0  ;;  %s2858_s0 = inlined_call_operand.hbm [shape: f32[4,128], index: 0, kind: input, shape index: {}]   ;;  %s2859_s1 = inlined_call_operand.vmem [shape: f32[2,128], index: 1, kind: input, shape index: {}]   ;;  %s2860_s2 = inlined_call_operand.hbm [shape: f32[128,128], index: 2, kind: input, shape index: {}]   ;;  %s2861_s3 = inlined_call_operand.hbm [shape: f32[4,128], index: 3, kind: output, shape index: {}]  }
   0x1   :  { %9 = vsyncpa [#allocation6], 0 }
   0x2   :  { %10 = vsyncpa [#allocation4], 0  ;;  %s2390_s12 = smov [#allocation2]   ;;  %s2391_s14 = smov [#allocation5]  }
   0x3   :  { %s17_s13 = sshll.u32 %s2390_s12, 4  ;;  %s28_s15 = sshll.u32 %s2391_s14, 4  ;;  %s18_s13 = int_to_ptr.vmem [resolvable:$true] %s17_s13  ;;  %s2418_s15 = int_to_ptr.vmem [resolvable:$true] %s28_s15 }
   0x4   :  { %s2318_s18 = scalar_lea.hbm %s2858_s0, 64 }
   0x5   :  { %p2319_p0 = scmp.ne.s32.totalorder %s2858_s0, %s2318_s18  ;;  %p2322_p1 = scmp.lt.u32.totalorder %s2318_s18, %s2858_s0 }
   0x7   :  { %p2324_p2 = pnand %p2322_p1, %p2319_p0 }
   0x9   :  { %2327 = shalt.err (!%p2324_p2)
}
   0xa   :  { %s2328_s23 = scalar_lea.vmem %s18_s13, 64  ;;  %p2333_p4 = scmp.lt.s32.totalorder %s18_s13, %s18_s13 }
   0xb   :  { %p2329_p3 = scmp.ne.s32.totalorder %s18_s13, %s2328_s23  ;;  %p2334_p5 = scmp.lt.s32.totalorder %s2328_s23, %s2328_s23 }
   0xd   :  { %p2335_p6 = por %p2334_p5, %p2333_p4 }
   0xf   :  { %p2336_p7 = pnand %p2335_p6, %p2329_p3 }
  0x11   :  { %2339 = shalt.err (!%p2336_p7)
}
  0x12   :  { %20 = dma.hbm_to_vmem [thread:$0]  %s2858_s0, 64, %s18_s13, [#allocation3]  }
  0x13   :  { %s2340_s28 = scalar_lea.hbm %s2860_s2, 2048 }
  0x14   :  { %p2341_p8 = scmp.ne.s32.totalorder %s2860_s2, %s2340_s28  ;;  %p2344_p9 = scmp.lt.u32.totalorder %s2340_s28, %s2860_s2 }
  0x16   :  { %p2346_p10 = pnand %p2344_p9, %p2341_p8 }
  0x18   :  { %2349 = shalt.err (!%p2346_p10)
}
  0x19   :  { %s2350_s6 = scalar_lea.vmem %s2418_s15, 2048  ;;  %p2355_p12 = scmp.lt.s32.totalorder %s2418_s15, %s2418_s15 }
  0x1a   :  { %p2351_p11 = scmp.ne.s32.totalorder %s2418_s15, %s2350_s6  ;;  %p2356_p13 = scmp.lt.s32.totalorder %s2350_s6, %s2350_s6 }
  0x1c   :  { %p2357_p0 = por %p2356_p13, %p2355_p12 }
  0x1e   :  { %p2358_p1 = pnand %p2357_p0, %p2351_p11 }
  0x20   :  { %2361 = shalt.err (!%p2358_p1)
}
  0x21   :  { %s2392_s0 = smov 128   ;;  %s2393_s7 = smov 8  }
  0x22   :  { %34 = dma.hbm_to_vmem [thread:$0]  %s2860_s2, 2048, %s2418_s15, [#allocation6], %s2392_s0, %s2392_s0, %s2393_s7  }
  0x23   :  { %2384 = dma.done.wait [#allocation3], 64  }
  0x24   :  { %2385 = vsyncadd [#allocation3], 4294967232 }
  0x25   :  { %2386 = dma.done.wait [#allocation6], 2048  }
  0x26   :  { %2387 = vsyncadd [#allocation6], 4294965248  ;;  %v2394_v0 = vmov 0.0|0.0   ;;  %vm2395_vm0 = vmmov 0   ;;  %v2396_v1 = vmov 0.0   ;;  %v42_v2 = vld [vmem:[#allocation5] sm:$0xff] }
  0x27   :  { %1999 = vmatprep.subr.bf16.mxu0 %v2394_v0  ;;  %1611 = vmatprep.mubr.msk.f32.mxu0 %vm2395_vm0, %v2396_v1  ;;  %v43_v3 = vld [vmem:[#allocation5 + $0x8] sm:$0xff]  ;;  %v44_v4 = vld [vmem:[#allocation5 + $0x10] sm:$0xff]  ;;  %v59_v5 = vand.u32 4294901760, %v42_v2  ;;  %v45_v7 = vld [vmem:[#allocation5 + $0x18] sm:$0xff]  ;;  %s2397_s13 = smov [#allocation7]  }
  0x28   :  { %2143 = vmatprep.subr.bf16.mxu1 %v2394_v0  ;;  %1821 = vmatprep.mubr.msk.f32.mxu1 %vm2395_vm0, %v2396_v1  ;;  %v62_v6 = vand.u32 4294901760, %v43_v3  ;;  %v65_v8 = vand.u32 4294901760, %v44_v4  ;;  %v68_v9 = vand.u32 4294901760, %v45_v7  ;;  %v46_v10 = vld [vmem:[#allocation5 + $0x20] sm:$0xff]  ;;  %v47_v11 = vld [vmem:[#allocation5 + $0x28] sm:$0xff]  ;;  %v48_v16 = vld [vmem:[#allocation5 + $0x30] sm:$0xff] }
  0x29   :  { %v71_v14 = vand.u32 4294901760, %v46_v10  ;;  %v74_v15 = vand.u32 4294901760, %v47_v11  ;;  %v49_v17 = vld [vmem:[#allocation5 + $0x38] sm:$0xff]  ;;  %v77_v19 = vand.u32 4294901760, %v48_v16  ;;  %v50_v21 = vld [vmem:[#allocation5 + $0x40] sm:$0xff]  ;;  %v51_v23 = vld [vmem:[#allocation5 + $0x48] sm:$0xff]  ;;  %v2477_v34 = vsub.f32 %v42_v2, %v59_v5 }
  0x2a   :  { %v2455_v12 = vpack.c.bf16 %v62_v6, %v59_v5  ;;  %v2458_v13 = vpack.c.bf16 %v68_v9, %v65_v8  ;;  %v80_v20 = vand.u32 4294901760, %v49_v17  ;;  %v2466_v22 = vld [vmem:[#allocation2] sm:$0xf]  ;;  %v52_v24 = vld [vmem:[#allocation5 + $0x50] sm:$0xff]  ;;  %v54_v26 = vld [vmem:[#allocation5 + $0x60] sm:$0xff]  ;;  %v83_v27 = vand.u32 4294901760, %v50_v21 }
  0x2b   :  { %v2464_v18 = vpack.c.bf16 %v74_v15, %v71_v14  ;;  %v53_v25 = vld [vmem:[#allocation5 + $0x58] sm:$0xff]  ;;  %v55_v28 = vld [vmem:[#allocation5 + $0x68] sm:$0xff]  ;;  %v56_v29 = vld [vmem:[#allocation5 + $0x70] sm:$0xff]  ;;  %v2472_v31 = vand.u32 4294901760, %v2466_v22  ;;  %v86_v33 = vand.u32 4294901760, %v51_v23  ;;  %v2479_v35 = vsub.f32 %v43_v3, %v62_v6  ;;  %s1363_s14 = sshll.u32 %s2397_s13, 4  ;;  %s1364_s14 = int_to_ptr.vmem [resolvable:$true] %s1363_s14 }
  0x2c   :  { %2001 = vmatpush3.bf16.msra.mxu0 %v2455_v12  ;;  %2145 = vmatpush3.bf16.msra.mxu1 %v2455_v12  ;;  %v57_v30 = vld [vmem:[#allocation5 + $0x78] sm:$0xff]  ;;  %v2475_v32 = vpack.c.bf16 %v80_v20, %v77_v19  ;;  %v89_v36 = vand.u32 4294901760, %v52_v24  ;;  %v92_v37 = vand.u32 4294901760, %v53_v25  ;;  %v95_v38 = vand.u32 4294901760, %v54_v26  ;;  %s2362_s15 = scalar_lea.vmem %s1364_s14, 64  ;;  %p2367_p3 = scmp.lt.s32.totalorder %s1364_s14, %s1364_s14 }
  0x2d   :  { %2002 = vmatprep.subr.bf16.mxu0 %v2394_v0  ;;  %2146 = vmatprep.subr.bf16.mxu1 %v2394_v0  ;;  %v98_v39 = vand.u32 4294901760, %v55_v28  ;;  %v101_v40 = vand.u32 4294901760, %v56_v29  ;;  %v104_v41 = vand.u32 4294901760, %v57_v30  ;;  %v2486_v42 = vsub.f32 %v2466_v22, %v2472_v31  ;;  %p2363_p2 = scmp.ne.s32.totalorder %s1364_s14, %s2362_s15  ;;  %p2368_p4 = scmp.lt.s32.totalorder %s2362_s15, %s2362_s15 }
  0x2e   :  { %v2488_v43 = vsub.f32 %v44_v4, %v65_v8  ;;  %v2491_v44 = vpack.c.bf16 %v86_v33, %v83_v27  ;;  %v152_v45 = vand.u32 4294901760, %v2477_v34  ;;  %v159_v46 = vand.u32 4294901760, %v2479_v35 }
  0x2f   :  { %v2495_v47 = vsub.f32 %v45_v7, %v68_v9  ;;  %v2499_v48 = vsub.f32 %v46_v10, %v71_v14  ;;  %v2502_v49 = vpack.c.bf16 %v92_v37, %v89_v36  ;;  %v2504_v50 = vpack.c.bf16 %v98_v39, %v95_v38  ;;  %p2369_p5 = por %p2368_p4, %p2367_p3 }
  0x30   :  { %2004 = vmatpush3.bf16.msra.mxu0 %v2458_v13  ;;  %2148 = vmatpush3.bf16.msra.mxu1 %v2458_v13  ;;  %v2506_v51 = vpack.c.bf16 %v104_v41, %v101_v40  ;;  %v141_v52 = vand.u32 4294901760, %v2486_v42  ;;  %v166_v53 = vand.u32 4294901760, %v2488_v43  ;;  %v2510_v54 = vsub.f32 %v47_v11, %v74_v15 }
  0x31   :  { %2005 = vmatprep.subr.bf16.mxu0 %v2394_v0  ;;  %2149 = vmatprep.subr.bf16.mxu1 %v2394_v0  ;;  %v2512_v55 = vsub.f32 %v48_v16, %v77_v19  ;;  %v153_v56 = vsub.f32 %v2477_v34, %v152_v45  ;;  %v160_v57 = vsub.f32 %v2479_v35, %v159_v46  ;;  %v173_v58 = vand.u32 4294901760, %v2495_v47  ;;  %p2370_p6 = pnand %p2369_p5, %p2363_p2 }
  0x32   :  { %v2518_v59 = vsub.f32 %v49_v17, %v80_v20  ;;  %v180_v60 = vand.u32 4294901760, %v2499_v48  ;;  %v2523_v61 = vsub.f32 %v50_v21, %v83_v27  ;;  %v2525_v62 = vsub.f32 %v51_v23, %v86_v33 }
  0x33   :  { %v2527_v63 = vsub.f32 %v52_v24, %v89_v36  ;;  %v2530_v2 = vsub.f32 %v53_v25, %v92_v37  ;;  %v2532_v3 = vsub.f32 %v54_v26, %v95_v38  ;;  %v2534_v4 = vsub.f32 %v55_v28, %v98_v39 }
  0x34   :  { %2007 = vmatpush3.bf16.msra.mxu0 %v2464_v18  ;;  %2151 = vmatpush3.bf16.msra.mxu1 %v2464_v18  ;;  %v2536_v5 = vsub.f32 %v56_v29, %v101_v40  ;;  %v142_v6 = vsub.f32 %v2486_v42, %v141_v52  ;;  %v167_v7 = vsub.f32 %v2488_v43, %v166_v53  ;;  %v187_v8 = vand.u32 4294901760, %v2510_v54 }
  0x35   :  { %2008 = vmatprep.subr.bf16.mxu0 %v2394_v0  ;;  %2152 = vmatprep.subr.bf16.mxu1 %v2394_v0  ;;  %v2543_v9 = vsub.f32 %v57_v30, %v104_v41  ;;  %v154_v10 = vand.u32 4294901760, %v153_v56  ;;  %v161_v11 = vand.u32 4294901760, %v160_v57  ;;  %v174_v14 = vsub.f32 %v2495_v47, %v173_v58 }
  0x36   :  { %v194_v15 = vand.u32 4294901760, %v2512_v55  ;;  %v201_v16 = vand.u32 4294901760, %v2518_v59  ;;  %v208_v17 = vand.u32 4294901760, %v2523_v61  ;;  %v215_v19 = vand.u32 4294901760, %v2525_v62 }
  0x37   :  { %v222_v20 = vand.u32 4294901760, %v2527_v63  ;;  %v229_v21 = vand.u32 4294901760, %v2530_v2  ;;  %v236_v23 = vand.u32 4294901760, %v2532_v3  ;;  %v243_v24 = vand.u32 4294901760, %v2534_v4 }
  0x38   :  { %2010 = vmatpush3.bf16.msra.mxu0 %v2475_v32  ;;  %2154 = vmatpush3.bf16.msra.mxu1 %v2475_v32  ;;  %v250_v25 = vand.u32 4294901760, %v2536_v5  ;;  %v257_v26 = vand.u32 4294901760, %v2543_v9  ;;  %v2560_v27 = vpack.c.bf16 %v159_v46, %v152_v45  ;;  %v2562_v28 = vpack.c.bf16 %v173_v58, %v166_v53 }
  0x39   :  { %2011 = vmatprep.subr.bf16.mxu0 %v2394_v0  ;;  %2155 = vmatprep.subr.bf16.mxu1 %v2394_v0  ;;  %v2564_v29 = vpack.c.bf16 %v187_v8, %v180_v60  ;;  %v2567_v30 = vpack.c.bf16 %v201_v16, %v194_v15  ;;  %v2569_v33 = vpack.c.bf16 %v215_v19, %v208_v17  ;;  %v143_v39 = vand.u32 4294901760, %v142_v6 }
  0x3a   :  { %v2571_v36 = vpack.c.bf16 %v229_v21, %v222_v20  ;;  %v2573_v37 = vpack.c.bf16 %v243_v24, %v236_v23  ;;  %v2576_v38 = vpack.c.bf16 %v257_v26, %v250_v25  ;;  %v181_v40 = vsub.f32 %v2499_v48, %v180_v60 }
  0x3b   :  { %v2582_v41 = vpack.c.bf16 %v161_v11, %v154_v10  ;;  %v168_v45 = vand.u32 4294901760, %v167_v7  ;;  %v175_v46 = vand.u32 4294901760, %v174_v14  ;;  %v188_v53 = vsub.f32 %v2510_v54, %v187_v8 }
  0x3c   :  { %2013 = vmatpush3.bf16.msra.mxu0 %v2491_v44  ;;  %2157 = vmatpush3.bf16.msra.mxu1 %v2491_v44  ;;  %v195_v56 = vsub.f32 %v2512_v55, %v194_v15  ;;  %v182_v58 = vand.u32 4294901760, %v181_v40  ;;  %v202_v6 = vsub.f32 %v2518_v59, %v201_v16  ;;  %v209_v11 = vsub.f32 %v2523_v61, %v208_v17 }
  0x3d   :  { %2014 = vmatprep.subr.bf16.mxu0 %v2394_v0  ;;  %2158 = vmatprep.subr.bf16.mxu1 %v2394_v0  ;;  %v2590_v57 = vpack.c.bf16 %v175_v46, %v168_v45  ;;  %v189_v60 = vand.u32 4294901760, %v188_v53  ;;  %v216_v14 = vsub.f32 %v2525_v62, %v215_v19  ;;  %v223_v15 = vsub.f32 %v2527_v63, %v222_v20 }
  0x3e   :  { %v196_v7 = vand.u32 4294901760, %v195_v56  ;;  %v203_v10 = vand.u32 4294901760, %v202_v6  ;;  %v230_v45 = vsub.f32 %v2530_v2, %v229_v21  ;;  %v237_v46 = vsub.f32 %v2532_v3, %v236_v23 }
  0x3f   :  { %v2597_v8 = vpack.c.bf16 %v189_v60, %v182_v58  ;;  %v217_v40 = vand.u32 4294901760, %v216_v14  ;;  %v224_v19 = vand.u32 4294901760, %v223_v15  ;;  %v244_v20 = vsub.f32 %v2534_v4, %v243_v24 }
  0x40   :  { %2016 = vmatpush3.bf16.msra.mxu0 %v2502_v49  ;;  %2160 = vmatpush3.bf16.msra.mxu1 %v2502_v49  ;;  %v2604_v16 = vpack.c.bf16 %v203_v10, %v196_v7  ;;  %v231_v53 = vand.u32 4294901760, %v230_v45  ;;  %v251_v56 = vsub.f32 %v2536_v5, %v250_v25  ;;  %v238_v21 = vand.u32 4294901760, %v237_v46 }
  0x41   :  { %2017 = vmatprep.subr.bf16.mxu0 %v2394_v0  ;;  %2161 = vmatprep.subr.bf16.mxu1 %v2394_v0  ;;  %v245_v60 = vand.u32 4294901760, %v244_v20  ;;  %v258_v23 = vsub.f32 %v2543_v9, %v257_v26  ;;  %v2631_v26 = vpack.c.bf16 %v2479_v35, %v2477_v34  ;;  %v2638_v10 = vpack.c.bf16 %v2495_v47, %v2488_v43 }
  0x42   :  { %v2616_v58 = vpack.c.bf16 %v231_v53, %v224_v19  ;;  %v252_v7 = vand.u32 4294901760, %v251_v56  ;;  %v2646_v34 = vpack.c.bf16 %v2510_v54, %v2499_v48  ;;  %v2652_v35 = vpack.c.bf16 %v2518_v59, %v2512_v55 }
  0x43   :  { %v2621_v6 = vpack.c.bf16 %v245_v60, %v238_v21  ;;  %v259_v24 = vand.u32 4294901760, %v258_v23  ;;  %v2658_v43 = vpack.c.bf16 %v2525_v62, %v2523_v61  ;;  %v2664_v47 = vpack.c.bf16 %v2530_v2, %v2527_v63 }
  0x44   :  { %2019 = vmatpush3.bf16.msra.mxu0 %v2504_v50  ;;  %2163 = vmatpush3.bf16.msra.mxu1 %v2504_v50  ;;  %v2670_v48 = vpack.c.bf16 %v2534_v4, %v2532_v3  ;;  %v2676_v54 = vpack.c.bf16 %v2543_v9, %v2536_v5 }
  0x45   :  { %2020 = vmatprep.subr.bf16.mxu0 %v2394_v0  ;;  %2164 = vmatprep.subr.bf16.mxu1 %v2394_v0  ;;  %v2625_v25 = vpack.c.bf16 %v259_v24, %v252_v7 }
  0x48   :  { %2022 = vmatpush3.bf16.msra.mxu0 %v2506_v51  ;;  %2166 = vmatpush3.bf16.msra.mxu1 %v2506_v51 }
  0x49   :  { %2023 = vmatprep.subr.bf16.mxu0 %v2394_v0  ;;  %2167 = vmatprep.subr.bf16.mxu1 %v2394_v0 }
  0x4b   :  { %1612 = vmatmul.mubr.f32.vlgmr.msra.gmra.mrb[0].mxu0 %v143_v39  ;;  %v210_v39 = vand.u32 4294901760, %v209_v11 }
  0x4c   :  { %2025 = vmatpush3.bf16.msra.mxu0 %v2582_v41  ;;  %1646 = vmatprep.mubr.msk.f32.mxu0 %vm2395_vm0, %v2396_v1 }
  0x4d   :  { %2026 = vmatprep.subr.bf16.mxu0 %v2394_v0  ;;  %v2610_v17 = vpack.c.bf16 %v217_v40, %v210_v39 }
  0x50   :  { %2028 = vmatpush3.bf16.msra.mxu0 %v2590_v57 }
  0x51   :  { %2029 = vmatprep.subr.bf16.mxu0 %v2394_v0 }
  0x54   :  { %2031 = vmatpush3.bf16.msra.mxu0 %v2597_v8 }
  0x55   :  { %2032 = vmatprep.subr.bf16.mxu0 %v2394_v0 }
  0x58   :  { %2034 = vmatpush3.bf16.msra.mxu0 %v2604_v16 }
  0x59   :  { %2035 = vmatprep.subr.bf16.mxu0 %v2394_v0 }
  0x5c   :  { %2037 = vmatpush3.bf16.msra.mxu0 %v2610_v17 }
  0x5d   :  { %2038 = vmatprep.subr.bf16.mxu0 %v2394_v0 }
  0x60   :  { %2040 = vmatpush3.bf16.msra.mxu0 %v2616_v58 }
  0x61   :  { %2041 = vmatprep.subr.bf16.mxu0 %v2394_v0 }
  0x64   :  { %2043 = vmatpush3.bf16.msra.mxu0 %v2621_v6 }
  0x65   :  { %2044 = vmatprep.subr.bf16.mxu0 %v2394_v0 }
  0x68   :  { %2046 = vmatpush3.bf16.msra.mxu0 %v2625_v25 }
  0x69   :  { %2047 = vmatprep.subr.bf16.mxu0 %v2394_v0 }
  0x6b   :  { %1647 = vmatmul.mubr.f32.vlgmr.msra.gmra.mrb[0].mxu0 %v2472_v31 }
  0x6c   :  { %2049 = vmatpush3.bf16.msra.mxu0 %v2631_v26  ;;  %1681 = vmatprep.mubr.msk.f32.mxu0 %vm2395_vm0, %v2396_v1 }
  0x6d   :  { %2050 = vmatprep.subr.bf16.mxu0 %v2394_v0 }
  0x70   :  { %2052 = vmatpush3.bf16.msra.mxu0 %v2638_v10 }
  0x71   :  { %2053 = vmatprep.subr.bf16.mxu0 %v2394_v0 }
  0x74   :  { %2055 = vmatpush3.bf16.msra.mxu0 %v2646_v34 }
  0x75   :  { %2056 = vmatprep.subr.bf16.mxu0 %v2394_v0 }
  0x78   :  { %2058 = vmatpush3.bf16.msra.mxu0 %v2652_v35 }
  0x79   :  { %2059 = vmatprep.subr.bf16.mxu0 %v2394_v0 }
  0x7c   :  { %2061 = vmatpush3.bf16.msra.mxu0 %v2658_v43 }
  0x7d   :  { %2062 = vmatprep.subr.bf16.mxu0 %v2394_v0 }
  0x80   :  { %2064 = vmatpush3.bf16.msra.mxu0 %v2664_v47 }
  0x81   :  { %2065 = vmatprep.subr.bf16.mxu0 %v2394_v0 }
  0x84   :  { %2067 = vmatpush3.bf16.msra.mxu0 %v2670_v48 }
  0x85   :  { %2068 = vmatprep.subr.bf16.mxu0 %v2394_v0 }
  0x88   :  { %2070 = vmatpush3.bf16.msra.mxu0 %v2676_v54 }
  0x89   :  { %2071 = vmatprep.subr.bf16.mxu0 %v2394_v0 }
  0x8b   :  { %1682 = vmatmul.mubr.f32.vlgmr.msra.gmra.mrb[0].mxu0 %v2486_v42 }
  0x8c   :  { %2073 = vmatpush3.bf16.msra.mxu0 %v2455_v12  ;;  %1716 = vmatprep.mubr.msk.f32.mxu0 %vm2395_vm0, %v2396_v1 }
  0x8d   :  { %2074 = vmatprep.subr.bf16.mxu0 %v2394_v0 }
  0x90   :  { %2076 = vmatpush3.bf16.msra.mxu0 %v2458_v13 }
  0x91   :  { %2077 = vmatprep.subr.bf16.mxu0 %v2394_v0 }
  0x94   :  { %2079 = vmatpush3.bf16.msra.mxu0 %v2464_v18 }
  0x95   :  { %2080 = vmatprep.subr.bf16.mxu0 %v2394_v0 }
  0x98   :  { %2082 = vmatpush3.bf16.msra.mxu0 %v2475_v32 }
  0x99   :  { %2083 = vmatprep.subr.bf16.mxu0 %v2394_v0 }
  0x9c   :  { %2085 = vmatpush3.bf16.msra.mxu0 %v2491_v44 }
  0x9d   :  { %2086 = vmatprep.subr.bf16.mxu0 %v2394_v0 }
  0xa0   :  { %2088 = vmatpush3.bf16.msra.mxu0 %v2502_v49 }
  0xa1   :  { %2089 = vmatprep.subr.bf16.mxu0 %v2394_v0 }
  0xa4   :  { %2091 = vmatpush3.bf16.msra.mxu0 %v2504_v50 }
  0xa5   :  { %2092 = vmatprep.subr.bf16.mxu0 %v2394_v0 }
  0xa8   :  { %2094 = vmatpush3.bf16.msra.mxu0 %v2506_v51 }
  0xa9   :  { %2095 = vmatprep.subr.bf16.mxu0 %v2394_v0 }
  0xab   :  { %1717 = vmatmul.mubr.f32.vlgmr.msra.gmra.mrb[0].mxu0 %v141_v52 }
  0xac   :  { %2097 = vmatpush3.bf16.msra.mxu0 %v2560_v27  ;;  %1751 = vmatprep.mubr.msk.f32.mxu0 %vm2395_vm0, %v2396_v1 }
  0xad   :  { %2098 = vmatprep.subr.bf16.mxu0 %v2394_v0 }
  0xb0   :  { %2100 = vmatpush3.bf16.msra.mxu0 %v2562_v28 }
  0xb1   :  { %2101 = vmatprep.subr.bf16.mxu0 %v2394_v0 }
  0xb4   :  { %2103 = vmatpush3.bf16.msra.mxu0 %v2564_v29 }
  0xb5   :  { %2104 = vmatprep.subr.bf16.mxu0 %v2394_v0 }
  0xb8   :  { %2106 = vmatpush3.bf16.msra.mxu0 %v2567_v30 }
  0xb9   :  { %2107 = vmatprep.subr.bf16.mxu0 %v2394_v0 }
  0xbc   :  { %2109 = vmatpush3.bf16.msra.mxu0 %v2569_v33 }
  0xbd   :  { %2110 = vmatprep.subr.bf16.mxu0 %v2394_v0 }
  0xc0   :  { %2112 = vmatpush3.bf16.msra.mxu0 %v2571_v36 }
  0xc1   :  { %2113 = vmatprep.subr.bf16.mxu0 %v2394_v0 }
  0xc4   :  { %2115 = vmatpush3.bf16.msra.mxu0 %v2573_v37 }
  0xc5   :  { %2116 = vmatprep.subr.bf16.mxu0 %v2394_v0 }
  0xc8   :  { %2118 = vmatpush3.bf16.msra.mxu0 %v2576_v38 }
  0xc9   :  { %2119 = vmatprep.subr.bf16.mxu0 %v2394_v0 }
  0xcb   :  { %1752 = vmatmul.mubr.f32.vlgmr.msra.gmra.mrb[0].mxu0 %v2472_v31 }
  0xcc   :  { %2121 = vmatpush3.bf16.msra.mxu0 %v2455_v12  ;;  %1786 = vmatprep.mubr.msk.f32.mxu0 %vm2395_vm0, %v2396_v1 }
  0xcd   :  { %2122 = vmatprep.subr.bf16.mxu0 %v2394_v0 }
  0xd0   :  { %2124 = vmatpush3.bf16.msra.mxu0 %v2458_v13 }
  0xd1   :  { %2125 = vmatprep.subr.bf16.mxu0 %v2394_v0 }
  0xd4   :  { %2127 = vmatpush3.bf16.msra.mxu0 %v2464_v18 }
  0xd5   :  { %2128 = vmatprep.subr.bf16.mxu0 %v2394_v0 }
  0xd8   :  { %2130 = vmatpush3.bf16.msra.mxu0 %v2475_v32 }
  0xd9   :  { %2131 = vmatprep.subr.bf16.mxu0 %v2394_v0 }
  0xdc   :  { %2133 = vmatpush3.bf16.msra.mxu0 %v2491_v44 }
  0xdd   :  { %2134 = vmatprep.subr.bf16.mxu0 %v2394_v0 }
  0xe0   :  { %2136 = vmatpush3.bf16.msra.mxu0 %v2502_v49 }
  0xe1   :  { %2137 = vmatprep.subr.bf16.mxu0 %v2394_v0 }
  0xe4   :  { %2139 = vmatpush3.bf16.msra.mxu0 %v2504_v50 }
  0xe5   :  { %2140 = vmatprep.subr.bf16.mxu0 %v2394_v0 }
  0xe8   :  { %2142 = vmatpush3.bf16.msra.mxu0 %v2506_v51 }
  0xeb   :  { %1787 = vmatmul.mubr.f32.vlgmr.msra.gmra.mrb[0].mxu0 %v2472_v31 }
 0x1be   :  { %v695_v42 = vpop.f32.mrb[0].mxu0 }
 0x1bf   :  { %v2740_v52 = vsub.f32 %v2466_v22, %v695_v42  ;;  %v1788_v55 = vpop.f32.mrb[1].mxu0  ;;  %v1373_v22 = vld [vmem:[%s2859_s1] ss:$0 sm:$0xff] }
 0x1c1   :  { %v700_v59 = vmul.f32 %v2740_v52, %v2740_v52 }
 0x1c3   :  { %v2744_v61 = vand.u32 4294901760, %v700_v59 }
 0x1c5   :  { %v783_v62 = vsub.f32 %v700_v59, %v2744_v61 }
 0x1c7   :  { %v784_v63 = vand.u32 4294901760, %v783_v62 }
 0x1c9   :  { %v785_v2 = vsub.f32 %v783_v62, %v784_v63 }
 0x1cb   :  { %v786_v3 = vand.u32 4294901760, %v785_v2 }
 0x1cd   :  { %1822 = vmatmul.mubr.f32.vlgmr.msra.gmra.mrb[0].mxu1 %v786_v3 }
 0x1ce   :  { %2169 = vmatpush3.bf16.msra.mxu1 %v2582_v41  ;;  %1856 = vmatprep.mubr.msk.f32.mxu1 %vm2395_vm0, %v2396_v1 }
 0x1cf   :  { %2170 = vmatprep.subr.bf16.mxu1 %v2394_v0 }
 0x1d2   :  { %2172 = vmatpush3.bf16.msra.mxu1 %v2590_v57 }
 0x1d3   :  { %2173 = vmatprep.subr.bf16.mxu1 %v2394_v0 }
 0x1d6   :  { %2175 = vmatpush3.bf16.msra.mxu1 %v2597_v8 }
 0x1d7   :  { %2176 = vmatprep.subr.bf16.mxu1 %v2394_v0 }
 0x1da   :  { %2178 = vmatpush3.bf16.msra.mxu1 %v2604_v16 }
 0x1db   :  { %2179 = vmatprep.subr.bf16.mxu1 %v2394_v0 }
 0x1de   :  { %2181 = vmatpush3.bf16.msra.mxu1 %v2610_v17 }
 0x1df   :  { %2182 = vmatprep.subr.bf16.mxu1 %v2394_v0 }
 0x1e2   :  { %2184 = vmatpush3.bf16.msra.mxu1 %v2616_v58 }
 0x1e3   :  { %2185 = vmatprep.subr.bf16.mxu1 %v2394_v0 }
 0x1e6   :  { %2187 = vmatpush3.bf16.msra.mxu1 %v2621_v6 }
 0x1e7   :  { %2188 = vmatprep.subr.bf16.mxu1 %v2394_v0 }
 0x1ea   :  { %2190 = vmatpush3.bf16.msra.mxu1 %v2625_v25 }
 0x1eb   :  { %2191 = vmatprep.subr.bf16.mxu1 %v2394_v0 }
 0x1ed   :  { %1857 = vmatmul.mubr.f32.vlgmr.msra.gmra.mrb[0].mxu1 %v2744_v61 }
 0x1ee   :  { %2193 = vmatpush3.bf16.msra.mxu1 %v2631_v26  ;;  %1891 = vmatprep.mubr.msk.f32.mxu1 %vm2395_vm0, %v2396_v1 }
 0x1ef   :  { %2194 = vmatprep.subr.bf16.mxu1 %v2394_v0 }
 0x1f2   :  { %2196 = vmatpush3.bf16.msra.mxu1 %v2638_v10 }
 0x1f3   :  { %2197 = vmatprep.subr.bf16.mxu1 %v2394_v0 }
 0x1f6   :  { %2199 = vmatpush3.bf16.msra.mxu1 %v2646_v34 }
 0x1f7   :  { %2200 = vmatprep.subr.bf16.mxu1 %v2394_v0 }
 0x1fa   :  { %2202 = vmatpush3.bf16.msra.mxu1 %v2652_v35 }
 0x1fb   :  { %2203 = vmatprep.subr.bf16.mxu1 %v2394_v0 }
 0x1fe   :  { %2205 = vmatpush3.bf16.msra.mxu1 %v2658_v43 }
 0x1ff   :  { %2206 = vmatprep.subr.bf16.mxu1 %v2394_v0 }
 0x202   :  { %2208 = vmatpush3.bf16.msra.mxu1 %v2664_v47 }
 0x203   :  { %2209 = vmatprep.subr.bf16.mxu1 %v2394_v0 }
 0x206   :  { %2211 = vmatpush3.bf16.msra.mxu1 %v2670_v48 }
 0x207   :  { %2212 = vmatprep.subr.bf16.mxu1 %v2394_v0 }
 0x20a   :  { %2214 = vmatpush3.bf16.msra.mxu1 %v2676_v54 }
 0x20b   :  { %2215 = vmatprep.subr.bf16.mxu1 %v2394_v0 }
 0x20d   :  { %1892 = vmatmul.mubr.f32.vlgmr.msra.gmra.mrb[0].mxu1 %v783_v62 }
 0x20e   :  { %2217 = vmatpush3.bf16.msra.mxu1 %v2455_v12  ;;  %1926 = vmatprep.mubr.msk.f32.mxu1 %vm2395_vm0, %v2396_v1 }
 0x20f   :  { %2218 = vmatprep.subr.bf16.mxu1 %v2394_v0 }
 0x212   :  { %2220 = vmatpush3.bf16.msra.mxu1 %v2458_v13 }
 0x213   :  { %2221 = vmatprep.subr.bf16.mxu1 %v2394_v0 }
 0x216   :  { %2223 = vmatpush3.bf16.msra.mxu1 %v2464_v18 }
 0x217   :  { %2224 = vmatprep.subr.bf16.mxu1 %v2394_v0 }
 0x21a   :  { %2226 = vmatpush3.bf16.msra.mxu1 %v2475_v32 }
 0x21b   :  { %2227 = vmatprep.subr.bf16.mxu1 %v2394_v0 }
 0x21e   :  { %2229 = vmatpush3.bf16.msra.mxu1 %v2491_v44 }
 0x21f   :  { %2230 = vmatprep.subr.bf16.mxu1 %v2394_v0 }
 0x222   :  { %2232 = vmatpush3.bf16.msra.mxu1 %v2502_v49 }
 0x223   :  { %2233 = vmatprep.subr.bf16.mxu1 %v2394_v0 }
 0x226   :  { %2235 = vmatpush3.bf16.msra.mxu1 %v2504_v50 }
 0x227   :  { %2236 = vmatprep.subr.bf16.mxu1 %v2394_v0 }
 0x22a   :  { %2238 = vmatpush3.bf16.msra.mxu1 %v2506_v51 }
 0x22b   :  { %2239 = vmatprep.subr.bf16.mxu1 %v2394_v0 }
 0x22d   :  { %1927 = vmatmul.mubr.f32.vlgmr.msra.gmra.mrb[0].mxu1 %v784_v63 }
 0x22e   :  { %2241 = vmatpush3.bf16.msra.mxu1 %v2560_v27  ;;  %1961 = vmatprep.mubr.msk.f32.mxu1 %vm2395_vm0, %v2396_v1 }
 0x22f   :  { %2242 = vmatprep.subr.bf16.mxu1 %v2394_v0 }
 0x232   :  { %2244 = vmatpush3.bf16.msra.mxu1 %v2562_v28 }
 0x233   :  { %2245 = vmatprep.subr.bf16.mxu1 %v2394_v0 }
 0x236   :  { %2247 = vmatpush3.bf16.msra.mxu1 %v2564_v29 }
 0x237   :  { %2248 = vmatprep.subr.bf16.mxu1 %v2394_v0 }
 0x23a   :  { %2250 = vmatpush3.bf16.msra.mxu1 %v2567_v30 }
 0x23b   :  { %2251 = vmatprep.subr.bf16.mxu1 %v2394_v0 }
 0x23e   :  { %2253 = vmatpush3.bf16.msra.mxu1 %v2569_v33 }
 0x23f   :  { %2254 = vmatprep.subr.bf16.mxu1 %v2394_v0 }
 0x242   :  { %2256 = vmatpush3.bf16.msra.mxu1 %v2571_v36 }
 0x243   :  { %2257 = vmatprep.subr.bf16.mxu1 %v2394_v0 }
 0x246   :  { %2259 = vmatpush3.bf16.msra.mxu1 %v2573_v37 }
 0x247   :  { %2260 = vmatprep.subr.bf16.mxu1 %v2394_v0 }
 0x24a   :  { %2262 = vmatpush3.bf16.msra.mxu1 %v2576_v38 }
 0x24b   :  { %2263 = vmatprep.subr.bf16.mxu1 %v2394_v0 }
 0x24d   :  { %1962 = vmatmul.mubr.f32.vlgmr.msra.gmra.mrb[0].mxu1 %v2744_v61 }
 0x24e   :  { %2265 = vmatpush3.bf16.msra.mxu1 %v2455_v12  ;;  %1996 = vmatprep.mubr.msk.f32.mxu1 %vm2395_vm0, %v2396_v1 }
 0x24f   :  { %2266 = vmatprep.subr.bf16.mxu1 %v2394_v0 }
 0x252   :  { %2268 = vmatpush3.bf16.msra.mxu1 %v2458_v13 }
 0x253   :  { %2269 = vmatprep.subr.bf16.mxu1 %v2394_v0 }
 0x256   :  { %2271 = vmatpush3.bf16.msra.mxu1 %v2464_v18 }
 0x257   :  { %2272 = vmatprep.subr.bf16.mxu1 %v2394_v0 }
 0x25a   :  { %2274 = vmatpush3.bf16.msra.mxu1 %v2475_v32  ;;  %v1374_v32 = vld [vmem:[%s2859_s1 + $0x1] ss:$0 sm:$0xff] }
 0x25b   :  { %2275 = vmatprep.subr.bf16.mxu1 %v2394_v0 }
 0x25e   :  { %2277 = vmatpush3.bf16.msra.mxu1 %v2491_v44 }
 0x25f   :  { %2278 = vmatprep.subr.bf16.mxu1 %v2394_v0 }
 0x262   :  { %2280 = vmatpush3.bf16.msra.mxu1 %v2502_v49 }
 0x263   :  { %2281 = vmatprep.subr.bf16.mxu1 %v2394_v0 }
 0x266   :  { %2283 = vmatpush3.bf16.msra.mxu1 %v2504_v50 }
 0x267   :  { %2284 = vmatprep.subr.bf16.mxu1 %v2394_v0 }
 0x26a   :  { %2286 = vmatpush3.bf16.msra.mxu1 %v2506_v51 }
 0x26d   :  { %1997 = vmatmul.mubr.f32.vlgmr.msra.gmra.mrb[0].mxu1 %v2744_v61 }
 0x340   :  { %v1338_v1 = vpop.f32.mrb[0].mxu1 }
 0x341   :  { %v2287_v12 = vadd.f32 1e-05, %v1338_v1  ;;  %v1998_v13 = vpop.f32.mrb[1].mxu1 }
 0x343   :  { %2316 = vrsqrt.f32 %v2287_v12 }
 0x34d   :  { %v2317_v18 = vpop.eup %2316 }
 0x34e   :  { %v1345_v31 = vmul.f32 %v2317_v18, %v2740_v52 }
 0x350   :  { %v1350_v0 = vmul.f32 %v1373_v22, %v1345_v31 }
 0x352   :  { %v1355_v44 = vadd.f32 %v1374_v32, %v1350_v0 }
 0x354   :  { %1356 = vst [vmem:[#allocation7] sm:$0xf] %v1355_v44 }
 0x355   :  { %2373 = shalt.err (!%p2370_p6)
}
 0x356   :  { %s2374_s18 = scalar_lea.hbm %s2861_s3, 64 }
 0x357   :  { %p2375_p7 = scmp.ne.s32.totalorder %s2861_s3, %s2374_s18  ;;  %p2378_p8 = scmp.lt.u32.totalorder %s2374_s18, %s2861_s3 }
 0x359   :  { %p2380_p9 = pnand %p2378_p8, %p2375_p7 }
 0x35b   :  { %2383 = shalt.err (!%p2380_p9)
}
 0x35c   :  { %1366 = dma.vmem_to_hbm [thread:$0]  %s1364_s14, 64, %s2861_s3, [#allocation4]  }
 0x35d   :  { %2388 = dma.done.wait [#allocation4], 64  }
 0x35e   :  { %2389 = vsyncadd [#allocation4], 4294967232 }
 0x35f   :  { %1370 = vsyncpa [#allocation3], 1 }
 0x360   :  { %1371 = vsyncpa [#allocation6], 1 }
 0x361   :  { %1372 = vsyncpa [#allocation4], 1 }

</bundles_post_ra>
